<compile_context>
chip_gen: v7x
topology: tpu7x:2x2x1
jax: 0.10.0
libtpu: 0.0.40
codegen_flags: <defaults>
</compile_context>

<pallas_src>
import math

import jax
import jax.numpy as jnp
from jax.experimental import pallas as pl
from jax.experimental.pallas import tpu as pltpu


def _round_up(x, m):
    return ((x + m - 1) // m) * m


def _default_vmem_limit():
    """Generation-aware VMEM budget: half of physical VMEM.

    -> ~64 MiB on v5e/v6e (128 MiB physical), ~32 MiB on v7x (64 MiB physical).
    """
    cap = 64 * 1024 * 1024
    try:
        cap = int(getattr(pltpu.get_tpu_info(), "vmem_capacity_bytes", cap))
    except Exception:  # pragma: no cover - defensive; assume TPU backend
        pass
    return max(32 * 1024 * 1024, cap // 2)


_VMEM_LIMIT = _default_vmem_limit()


# ----------------------------- tiling helpers ---------------------------------

def _pick_row_tile(n_rows, max_tile, min_tile=128):
    """Row tile (multiple of 8) + padded row count.

    Prefers a tile that divides the 8-rounded row count exactly (so jnp.pad is a
    no-op and no MXU/DMA work is wasted on zero rows); falls back to padding only
    when exact divisors would be degenerately small.
    """
    np8 = _round_up(n_rows, 8)
    cap = min(_round_up(max_tile, 8), np8)
    t = cap
    while t >= 8:
        if np8 % t == 0:
            break
        t -= 8
    if t >= min(min_tile, np8):
        return t, np8
    return cap, _round_up(n_rows, cap)


def _heads_tiling(bq, n_layers, max_rows=2048):
    """Per-layer row tiling for the detection heads.

    tiles_per_layer == 1 when the layer fits (reference block becomes grid-invariant);
    it is bumped to 2 when n_layers is odd so the total grid length stays even and
    v7x's two TensorCores get balanced work (harmless on single-TC v5e/v6e).
    """
    tiles_per_layer = 1 if n_layers % 2 == 0 else 2
    while _round_up(bq, 8 * tiles_per_layer) // tiles_per_layer > max_rows:
        tiles_per_layer *= 2
    bq_pad = _round_up(bq, 8 * tiles_per_layer)
    tile = bq_pad // tiles_per_layer
    return tile, tiles_per_layer, bq_pad


# ----------------------------- Pallas kernels --------------------------------

def _proj_kernel(x_ref, w_ref, b_ref, o_ref):
    # x: (TN, Cin) bf16, w: (Cin, Dp) bf16, b: (1, Dp) f32 -> o: (TN, Dp) bf16
    acc = jnp.dot(x_ref[...], w_ref[...], preferred_element_type=jnp.float32)
    o_ref[...] = (acc + b_ref[...]).astype(o_ref.dtype)


def input_proj_pallas(src_nchw, w_t_bf16, b_row_f32, *, row_tile=512):
    """1x1 Conv2d(Cin -> D). Returns a channels-last (B, H*W, Dp) bf16 slab.

    w_t_bf16: (Cin, Dp) bf16 (pre-transposed / lane-padded), b_row_f32: (1, Dp) f32.
    Padded output lanes are exactly zero (zero weight columns, zero bias pad).
    """
    B, C, H, W = src_nchw.shape
    Dp = w_t_bf16.shape[1]
    N = B * H * W

    tile, Np = _pick_row_tile(N, row_tile)

    # bf16 cast BEFORE the transpose halves the XLA transpose HBM traffic; the
    # transpose-back to NCHW is eliminated — consumers take this channels-last slab.
    x = jnp.transpose(src_nchw.astype(jnp.bfloat16), (0, 2, 3, 1)).reshape(N, C)
    if Np != N:
        x = jnp.pad(x, ((0, Np - N), (0, 0)))

    out = pl.pallas_call(
        _proj_kernel,
        grid=(Np // tile,),
        in_specs=[
            pl.BlockSpec((tile, C), lambda i: (i, 0)),   # row tile of activations
            pl.BlockSpec((C, Dp), lambda i: (0, 0)),     # weight, grid-invariant (no re-DMA)
            pl.BlockSpec((1, Dp), lambda i: (0, 0)),     # bias, grid-invariant
        ],
        out_specs=pl.BlockSpec((tile, Dp), lambda i: (i, 0)),
        out_shape=jax.ShapeDtypeStruct((Np, Dp), jnp.bfloat16),
        compiler_params=pltpu.CompilerParams(
            dimension_semantics=("parallel",),
            vmem_limit_bytes=_VMEM_LIMIT,
        ),
    )(x, w_t_bf16, b_row_f32)
    if Np != N:
        out = out[:N]
    return out.reshape(B, H * W, Dp)


def _heads_kernel(hs_ref, ref_ref, wc1_ref, bc1_ref, w2_ref, b2_ref, w3_ref, b3_ref,
                  logits_ref, coords_ref):
    h = hs_ref[...]                        # (T, Dp) bf16 — rows of one decoder layer
    ncp = logits_ref.shape[1]

    # Fused class head + point-MLP layer 1: one (T,Dp)x(Dp,NCp+Dp) MXU pass, then split
    # columns on a 128-lane boundary.  bf16 matmul, f32 accumulate + bias.
    fused = jnp.dot(h, wc1_ref[...], preferred_element_type=jnp.float32) + bc1_ref[...]
    logits_ref[...] = fused[:, :ncp].astype(logits_ref.dtype)

    x1 = jnp.maximum(fused[:, ncp:], 0.0)
    x2 = jnp.maximum(
        jnp.dot(x1.astype(jnp.bfloat16), w2_ref[...],
                preferred_element_type=jnp.float32) + b2_ref[...], 0.0)
    tmp = jnp.dot(x2.astype(jnp.bfloat16), w3_ref[...],
                  preferred_element_type=jnp.float32) + b3_ref[...]

    # tmp[..., :2] += inverse_sigmoid(reference): ref tile is zero-padded beyond lane 2,
    # so the add is a full-width unmasked op; padded lanes are ignored by the caller.
    coords_ref[...] = jax.nn.sigmoid(tmp + ref_ref[...]).astype(coords_ref.dtype)


def detr_heads_pallas(hs, ref_before_sigmoid, p, *, max_rows=2048):
    """hs: (L, B, Q, Dp) f32 (D lane-padded, pad cols zero); ref: (B, Q, 2) f32.

    p holds lane-padded bf16 weights / f32 biases.  Returns padded slabs
    (L, BQp, NCp) logits and (L, BQp, CPp) coords — the caller slices the real
    widths only at the final API boundary.
    """
    L, B, Q, Dp = hs.shape
    BQ = B * Q
    CPp = p["w3"].shape[1]
    NCp = p["wc1"].shape[1] - Dp

    tile, tpl, BQp = _heads_tiling(BQ, L, max_rows)
    grid = (L * tpl,)

    hs2 = hs.reshape(L, BQ, Dp)
    if BQp != BQ:
        hs2 = jnp.pad(hs2, ((0, 0), (0, BQp - BQ), (0, 0)))
    hs_rows = hs2.reshape(L * BQp, Dp).astype(jnp.bfloat16)

    # (B*Q, 2) -> lane-dense (BQp, CPp), zero-padded (kept in f32 for the add).
    ref = ref_before_sigmoid.reshape(BQ, 2).astype(jnp.float32)
    ref = jnp.pad(ref, ((0, BQp - BQ), (0, CPp - 2)))

    in_specs = [
        pl.BlockSpec((tile, Dp), lambda i: (i, 0)),          # hs rows
        pl.BlockSpec((tile, CPp), lambda i: (i % tpl, 0)),   # reference; grid-invariant when tpl==1
        pl.BlockSpec((Dp, NCp + Dp), lambda i: (0, 0)),      # fused [class | MLP1] weight
        pl.BlockSpec((1, NCp + Dp), lambda i: (0, 0)),       # fused bias
        pl.BlockSpec((Dp, Dp), lambda i: (0, 0)),            # point W2
        pl.BlockSpec((1, Dp), lambda i: (0, 0)),             # point b2
        pl.BlockSpec((Dp, CPp), lambda i: (0, 0)),           # point W3 (zero-init)
        pl.BlockSpec((1, CPp), lambda i: (0, 0)),            # point b3 (zero-init)
    ]
    out_specs = [
        pl.BlockSpec((tile, NCp), lambda i: (i, 0)),
        pl.BlockSpec((tile, CPp), lambda i: (i, 0)),
    ]
    out_shape = (
        jax.ShapeDtypeStruct((L * BQp, NCp), jnp.float32),
        jax.ShapeDtypeStruct((L * BQp, CPp), jnp.float32),
    )
    logits, coords = pl.pallas_call(
        _heads_kernel,
        grid=grid,
        in_specs=in_specs,
        out_specs=out_specs,
        out_shape=out_shape,
        compiler_params=pltpu.CompilerParams(
            dimension_semantics=("parallel",),   # independent row tiles (2 TCs on v7x)
            vmem_limit_bytes=_VMEM_LIMIT,
        ),
    )(hs_rows, ref, p["wc1"], p["bc1"], p["w2"], p["b2"], p["w3"], p["b3"])

    return logits.reshape(L, BQp, NCp), coords.reshape(L, BQp, CPp)


# ------------------------------ glue / params --------------------------------

def inverse_sigmoid(x, eps=1e-5):
    x = jnp.clip(x, 0.0, 1.0)
    x1 = jnp.maximum(x, eps)
    x2 = jnp.maximum(1.0 - x, eps)
    return jnp.log(x1 / x2)


def _linear_init(key, fan_in, fan_out):
    kw, kb = jax.random.split(key)
    bound = 1.0 / math.sqrt(fan_in)
    w = jax.random.uniform(kw, (fan_in, fan_out), jnp.float32, -bound, bound)
    b = jax.random.uniform(kb, (1, fan_out), jnp.float32, -bound, bound)
    return w, b


class ConditionalDETRPallas:
    def __init__(self, num_classes, num_queries, channel_point,
                 hidden_dim, num_channels, num_dec_layers, key):
        self.num_queries = num_queries
        self.num_dec_layers = num_dec_layers
        self.hidden_dim = hidden_dim
        self.num_classes = num_classes
        self.channel_point = channel_point
        keys = jax.random.split(key, 12)

        nc_pad = _round_up(num_classes, 128)
        cp_pad = _round_up(channel_point, 128)
        d_pad = _round_up(hidden_dim, 128)
        self.d_pad = d_pad

        # input_proj: Conv2d(num_channels, hidden_dim, kernel_size=1)
        bound = 1.0 / math.sqrt(num_channels)
        proj_w = jax.random.uniform(
            keys[0], (hidden_dim, num_channels), jnp.float32, -bound, bound)
        proj_b = jax.random.uniform(
            keys[1], (hidden_dim,), jnp.float32, -bound, bound)
        # pre-transpose / lane-pad / cast once (no per-call re-layout work);
        # padded output channels get zero weight + zero bias -> exactly zero.
        self.proj_w_t = jnp.pad(
            proj_w.T, ((0, 0), (0, d_pad - hidden_dim))).astype(jnp.bfloat16)   # (Cin, Dp)
        self.proj_b_row = jnp.pad(
            proj_b, (0, d_pad - hidden_dim)).reshape(1, d_pad).astype(jnp.float32)

        # class_embed: Linear(hidden_dim, num_classes), bias = -log((1-p)/p)
        prior_prob = 0.01
        bias_value = -math.log((1 - prior_prob) / prior_prob)
        wc, _ = _linear_init(keys[2], hidden_dim, num_classes)
        bc = jnp.ones((1, num_classes), jnp.float32) * bias_value

        # point_embed: MLP(hidden_dim, hidden_dim, channel_point, 3); last layer zero-init
        w1, b1 = _linear_init(keys[3], hidden_dim, hidden_dim)
        w2, b2 = _linear_init(keys[4], hidden_dim, hidden_dim)
        w3 = jnp.zeros((hidden_dim, channel_point), jnp.float32)
        b3 = jnp.zeros((1, channel_point), jnp.float32)

        # lane-pad every output AND contraction dimension with zeros (numerically exact),
        # fuse class head + MLP layer 1 into one weight, cast once at init.
        wc_p = jnp.pad(wc, ((0, d_pad - hidden_dim), (0, nc_pad - num_classes)))
        bc_p = jnp.pad(bc, ((0, 0), (0, nc_pad - num_classes)))
        w1_p = jnp.pad(w1, ((0, d_pad - hidden_dim), (0, d_pad - hidden_dim)))
        b1_p = jnp.pad(b1, ((0, 0), (0, d_pad - hidden_dim)))
        w2_p = jnp.pad(w2, ((0, d_pad - hidden_dim), (0, d_pad - hidden_dim)))
        b2_p = jnp.pad(b2, ((0, 0), (0, d_pad - hidden_dim)))
        w3_p = jnp.pad(w3, ((0, d_pad - hidden_dim), (0, cp_pad - channel_point)))
        b3_p = jnp.pad(b3, ((0, 0), (0, cp_pad - channel_point)))

        self.head_params = dict(
            wc1=jnp.concatenate([wc_p, w1_p], axis=1).astype(jnp.bfloat16),  # (Dp, NCp+Dp)
            bc1=jnp.concatenate([bc_p, b1_p], axis=1).astype(jnp.float32),   # (1,  NCp+Dp)
            w2=w2_p.astype(jnp.bfloat16), b2=b2_p.astype(jnp.float32),
            w3=w3_p.astype(jnp.bfloat16), b3=b3_p.astype(jnp.float32),
        )

        # query_embed: Embedding(num_queries, hidden_dim), N(0, 1) init (lane-padded)
        qe = jax.random.normal(keys[5], (num_queries, hidden_dim), jnp.float32)
        self.query_embed = jnp.pad(qe, ((0, 0), (0, d_pad - hidden_dim)))

        # TODO(synk): backbone and transformer are external modules in the torch code;
        # deterministic stand-in parameters for the transformer stub below (lane-padded,
        # zero rows/cols in the padding so padded hidden lanes stay exactly zero).
        w_ref = jax.random.normal(keys[6], (hidden_dim, 2), jnp.float32) * 0.1
        self.w_ref = jnp.pad(w_ref, ((0, d_pad - hidden_dim), (0, 0)))
        w_hs = jax.random.normal(
            keys[7], (num_dec_layers, hidden_dim, hidden_dim), jnp.float32) * 0.1
        self.w_hs = jnp.pad(
            w_hs, ((0, 0), (0, d_pad - hidden_dim), (0, d_pad - hidden_dim)))

    # --- stubs for external modules (plain JAX glue) ---
    def _backbone_stub(self, samples):
        # TODO(synk): real backbone (ResNet + positional encoding) not implemented;
        # the input is treated directly as the last feature map, mask = all-valid.
        B, C, H, W = samples.shape
        mask = jnp.zeros((B, H, W), jnp.bool_)
        pos = jnp.zeros((B, self.hidden_dim, H, W), jnp.float32)
        return samples, mask, pos

    def _transformer_stub(self, memory_bld, mask, query_embed, pos):
        # TODO(synk): real conditional-DETR transformer not implemented; this stub
        # produces hs (L, B, Q, Dp) and reference (B, Q, 2) deterministically.
        # memory_bld is the channels-last (B, H*W, Dp) bf16 slab from input_proj.
        mem_mean = jnp.mean(memory_bld.astype(jnp.float32), axis=1)         # (B, Dp)
        q_b = query_embed[None, :, :] + 0.1 * mem_mean[:, None, :]          # (B, Q, Dp)
        reference = jax.nn.sigmoid(q_b @ self.w_ref)                        # (B, Q, 2)
        hs = jnp.stack([jnp.tanh(q_b @ self.w_hs[l])
                        for l in range(self.num_dec_layers)], axis=0)       # (L, B, Q, Dp)
        return hs, reference

    # --- forward ---
    def __call__(self, samples):
        src, mask, pos = self._backbone_stub(samples)

        # input_proj (Pallas row-tiled 1x1-conv kernel) — channels-last, bf16, lane-padded
        memory = input_proj_pallas(src, self.proj_w_t, self.proj_b_row)      # (B, H*W, Dp)

        hs, reference = self._transformer_stub(memory, mask, self.query_embed, pos)

        ref_before_sigmoid = inverse_sigmoid(reference)                      # (B, Q, 2)

        # fused class head + point MLP + reference add + sigmoid, all decoder layers.
        # Returns padded slabs; un-pad only the last-layer API outputs.
        logits_p, coords_p = detr_heads_pallas(hs, ref_before_sigmoid, self.head_params)

        B, Q = reference.shape[0], reference.shape[1]
        BQ = B * Q
        pred_logits = logits_p[-1, :BQ, :self.num_classes].reshape(B, Q, self.num_classes)
        pred_points = coords_p[-1, :BQ, :self.channel_point].reshape(B, Q, self.channel_point)
        return {"pred_logits": pred_logits, "pred_points": pred_points}


# ---------------------------------- main --------------------------------------

if __name__ == "__main__":
    key = jax.random.PRNGKey(0)
    k_in, k_model = jax.random.split(key)

    # Small shapes consistent with the module
    B, C, H, W = 2, 4, 16, 16           # backbone feature map (NCHW)
    hidden_dim = 32
    num_queries = 8
    num_classes = 7
    channel_point = 4
    num_dec_layers = 3

    model = ConditionalDETRPallas(
        num_classes=num_classes, num_queries=num_queries,
        channel_point=channel_point, hidden_dim=hidden_dim,
        num_channels=C, num_dec_layers=num_dec_layers, key=k_model)

    samples = jax.random.normal(k_in, (B, C, H, W), jnp.float32)

    out = model(samples)
    jax.block_until_ready(out["pred_logits"])
    jax.block_until_ready(out["pred_points"])

    assert out["pred_logits"].shape == (B, num_queries, num_classes)
    assert out["pred_points"].shape == (B, num_queries, channel_point)
    assert bool(jnp.all(jnp.isfinite(out["pred_logits"])))
    assert bool(jnp.all((out["pred_points"] >= 0.0) & (out["pred_points"] <= 1.0)))
    print("KERNEL_OK")
</pallas_src>

<mosaic_0001>
module attributes {stable_mosaic.version = 11 : i64} {
  func.func @_proj_kernel(%arg0: i32, %arg1: memref<512x4xbf16, #tpu.memory_space<vmem>>, %arg2: memref<4x128xbf16, #tpu.memory_space<vmem>>, %arg3: memref<1x128xf32, #tpu.memory_space<vmem>>, %arg4: memref<512x128xbf16, #tpu.memory_space<vmem>>) attributes {dimension_semantics = [#tpu.dimension_semantics<parallel>], iteration_bounds = array<i64: 1>, scalar_prefetch = 0 : i64, scratch_operands = 0 : i64, tpu.core_type = #tpu.core_type<tc>, window_params = [{transform_indices = @transform_0, window_bounds = array<i64: 512, 4>}, {pipeline_mode = #tpu.pipeline_mode<synchronous>, transform_indices = @transform_1, window_bounds = array<i64: 4, 128>}, {pipeline_mode = #tpu.pipeline_mode<synchronous>, transform_indices = @transform_2, window_bounds = array<i64: 1, 128>}, {transform_indices = @transform_3, window_bounds = array<i64: 512, 128>}]} {
    %c0 = arith.constant 0 : index
    %c0_0 = arith.constant 0 : index
    %0 = vector.load %arg1[%c0, %c0_0] : memref<512x4xbf16, #tpu.memory_space<vmem>>, vector<512x4xbf16>
    %c0_1 = arith.constant 0 : index
    %c0_2 = arith.constant 0 : index
    %1 = vector.load %arg2[%c0_1, %c0_2] : memref<4x128xbf16, #tpu.memory_space<vmem>>, vector<4x128xbf16>
    %cst = arith.constant dense<0.000000e+00> : vector<512x128xf32>
    %2 = tpu.matmul %0, %1, %cst {dimension_numbers = #tpu.dot_dimension_numbers<[1], [0], [0], [1], [0, 0, 1, 1], [], []>} : vector<512x4xbf16>, vector<4x128xbf16>, vector<512x128xf32> -> vector<512x128xf32>
    %c0_3 = arith.constant 0 : index
    %c0_4 = arith.constant 0 : index
    %3 = vector.load %arg3[%c0_3, %c0_4] : memref<1x128xf32, #tpu.memory_space<vmem>>, vector<1x128xf32>
    %4 = vector.broadcast %3 : vector<1x128xf32> to vector<512x128xf32>
    %5 = arith.addf %2, %4 : vector<512x128xf32>
    %6 = arith.truncf %5 : vector<512x128xf32> to vector<512x128xbf16>
    %c0_5 = arith.constant 0 : index
    %c0_6 = arith.constant 0 : index
    %7 = vector.load %arg4[%c0_5, %c0_6] : memref<512x128xbf16, #tpu.memory_space<vmem>>, vector<512x128xbf16>
    tpu.vector_store %arg4[%c0_5, %c0_6], %6 {strides = array<i32>} : memref<512x128xbf16, #tpu.memory_space<vmem>>, vector<512x128xbf16>,
    return
  }
  func.func @transform_0(%arg0: i32) -> (i32, i32) {
    %c0_i32 = arith.constant 0 : i32
    %c0_i32_0 = arith.constant 0 : i32
    return %arg0, %c0_i32 : i32, i32
  }
  func.func @transform_1(%arg0: i32) -> (i32, i32) {
    %c0_i32 = arith.constant 0 : i32
    %c0_i32_0 = arith.constant 0 : i32
    %c0_i32_1 = arith.constant 0 : i32
    return %c0_i32, %c0_i32_0 : i32, i32
  }
  func.func @transform_2(%arg0: i32) -> (i32, i32) {
    %c0_i32 = arith.constant 0 : i32
    %c0_i32_0 = arith.constant 0 : i32
    %c0_i32_1 = arith.constant 0 : i32
    return %c0_i32, %c0_i32_0 : i32, i32
  }
  func.func @transform_3(%arg0: i32) -> (i32, i32) {
    %c0_i32 = arith.constant 0 : i32
    %c0_i32_0 = arith.constant 0 : i32
    return %arg0, %c0_i32 : i32, i32
  }
}

</mosaic_0001>

<bundles_post_ra>
// kernel: tpu_custom_call.1
= control target key start
LH: loop header
LB: loop body
LE: loop exit
PB: predicated region body
PF: predicated region fallthrough
CT: control target
= control target key end

     0   :  { %vm345_vm0 = vcmask 1041408   ;;  %vm248_vm1 = vcmask 31744   ;;  %s1755_s0 = inlined_call_operand.vmem [shape: bf16[512,4], index: 0, kind: input, shape index: {}]   ;;  %s1756_s1 = inlined_call_operand.vmem [shape: bf16[4,128], index: 1, kind: input, shape index: {}]   ;;  %s1757_s2 = inlined_call_operand.vmem [shape: f32[1,128], index: 2, kind: input, shape index: {}]   ;;  %s1758_s3 = inlined_call_operand.hbm [shape: bf16[512,128], index: 3, kind: output, shape index: {}]  }
   0x1   :  { %v80_v0 = vld [vmem:[%s1756_s1] sm:$0x3]  ;;  %v1466_v4 = vld [vmem:[%s1755_s0 + $0x8] sm:$0xff]   ;;  %v1468_v6 = vld [vmem:[%s1755_s0 + $0x10] sm:$0xff]  }
   0x2   :  { %v1464_v1 = vld [vmem:[%s1755_s0] sm:$0xff]   ;;  %1459 = vmatprep.subr.msk.bf16.mxu0 %vm345_vm0, %v80_v0  ;;  %1460 = vmatprep.subr.msk.bf16.mxu1 %vm345_vm0, %v80_v0  ;;  %v347_v2 = vsel %vm345_vm0, %v80_v0, 0  ;;  %v1467_v5 = vld [vmem:[%s1755_s0 + $0x88] sm:$0xff]   ;;  %v1469_v7 = vld [vmem:[%s1755_s0 + $0x90] sm:$0xff]  }
   0x3   :  { %1392 = vmatpush3.bf16.msra.mxu0 %v347_v2  ;;  %1458 = vmatpush3.bf16.msra.mxu1 %v347_v2  ;;  %v1465_v3 = vld [vmem:[%s1755_s0 + $0x80] sm:$0xff]   ;;  %v1470_v8 = vld [vmem:[%s1755_s0 + $0x18] sm:$0xff]   ;;  %v1474_v12 = vld [vmem:[%s1755_s0 + $0x28] sm:$0xff]  }
   0x4   :  { %1393 = vmatprep.mubr.msk.bf16.mxu0 %vm248_vm1, %v1464_v1  ;;  %1425 = vmatprep.mubr.msk.bf16.mxu1 %vm248_vm1, %v1465_v3  ;;  %v1471_v9 = vld [vmem:[%s1755_s0 + $0x98] sm:$0xff]   ;;  %v1472_v10 = vld [vmem:[%s1755_s0 + $0x20] sm:$0xff]   ;;  %v1475_v13 = vld [vmem:[%s1755_s0 + $0xa8] sm:$0xff]  }
   0x5   :  { %v1473_v11 = vld [vmem:[%s1755_s0 + $0xa0] sm:$0xff]   ;;  %v1476_v14 = vld [vmem:[%s1755_s0 + $0x30] sm:$0xff]   ;;  %v1478_v16 = vld [vmem:[%s1755_s0 + $0x38] sm:$0xff]  }
   0x6   :  { %1394 = vmatmul.mubr.msk.bf16.vlgmr.msra.gmra.mrb[0].mxu0 %vm248_vm1, %v1466_v4  ;;  %1426 = vmatmul.mubr.msk.bf16.vlgmr.msra.gmra.mrb[0].mxu1 %vm248_vm1, %v1467_v5  ;;  %v1477_v15 = vld [vmem:[%s1755_s0 + $0xb0] sm:$0xff]   ;;  %v1479_v17 = vld [vmem:[%s1755_s0 + $0xb8] sm:$0xff]   ;;  %v1480_v18 = vld [vmem:[%s1755_s0 + $0x40] sm:$0xff]  }
   0x7   :  { %1397 = vmatprep.mubr.msk.bf16.mxu0 %vm248_vm1, %v1468_v6  ;;  %1429 = vmatprep.mubr.msk.bf16.mxu1 %vm248_vm1, %v1469_v7  ;;  %v1481_v19 = vld [vmem:[%s1755_s0 + $0xc0] sm:$0xff]  }
   0xe   :  { %1398 = vmatmul.mubr.msk.bf16.gmra.mrb[4].mxu0 %vm248_vm1, %v1470_v8  ;;  %1430 = vmatmul.mubr.msk.bf16.gmra.mrb[4].mxu1 %vm248_vm1, %v1471_v9 }
   0xf   :  { %1401 = vmatprep.mubr.msk.bf16.mxu0 %vm248_vm1, %v1472_v10  ;;  %1433 = vmatprep.mubr.msk.bf16.mxu1 %vm248_vm1, %v1473_v11 }
  0x16   :  { %1402 = vmatmul.mubr.msk.bf16.gmra.mrb[8].mxu0 %vm248_vm1, %v1474_v12  ;;  %1434 = vmatmul.mubr.msk.bf16.gmra.mrb[8].mxu1 %vm248_vm1, %v1475_v13 }
  0x17   :  { %1405 = vmatprep.mubr.msk.bf16.mxu0 %vm248_vm1, %v1476_v14  ;;  %1437 = vmatprep.mubr.msk.bf16.mxu1 %vm248_vm1, %v1477_v15 }
  0x1e   :  { %1406 = vmatmul.mubr.msk.bf16.gmra.mrb[12].mxu0 %vm248_vm1, %v1478_v16  ;;  %1438 = vmatmul.mubr.msk.bf16.gmra.mrb[12].mxu1 %vm248_vm1, %v1479_v17 }
  0x1f   :  { %1409 = vmatprep.mubr.msk.bf16.mxu0 %vm248_vm1, %v1480_v18  ;;  %1441 = vmatprep.mubr.msk.bf16.mxu1 %vm248_vm1, %v1481_v19 }
  0x20   :  { %8 = vsyncpa [#allocation3], 0  ;;  %v1482_v20 = vld [vmem:[%s1755_s0 + $0x48] sm:$0xff]   ;;  %v1484_v22 = vld [vmem:[%s1755_s0 + $0x50] sm:$0xff]  }
  0x21   :  { %v1483_v21 = vld [vmem:[%s1755_s0 + $0xc8] sm:$0xff]   ;;  %v1485_v23 = vld [vmem:[%s1755_s0 + $0xd0] sm:$0xff]   ;;  %v1486_v24 = vld [vmem:[%s1755_s0 + $0x58] sm:$0xff]  }
  0x22   :  { %v1487_v25 = vld [vmem:[%s1755_s0 + $0xd8] sm:$0xff]   ;;  %v1488_v26 = vld [vmem:[%s1755_s0 + $0x60] sm:$0xff]   ;;  %v1490_v28 = vld [vmem:[%s1755_s0 + $0x68] sm:$0xff]  }
  0x23   :  { %v1489_v27 = vld [vmem:[%s1755_s0 + $0xe0] sm:$0xff]   ;;  %v1491_v29 = vld [vmem:[%s1755_s0 + $0xe8] sm:$0xff]   ;;  %v1492_v30 = vld [vmem:[%s1755_s0 + $0x70] sm:$0xff]  }
  0x24   :  { %v1493_v31 = vld [vmem:[%s1755_s0 + $0xf0] sm:$0xff]   ;;  %v1494_v32 = vld [vmem:[%s1755_s0 + $0x78] sm:$0xff]   ;;  %v1677_v35 = vld [vmem:[%s1757_s2] ss:$0 sm:$0xff] }
  0x25   :  { %v1495_v33 = vld [vmem:[%s1755_s0 + $0xf8] sm:$0xff]   ;;  %s1520_s0 = smov [#allocation2]  }
  0x26   :  { %1410 = vmatmul.mubr.msk.bf16.gmra.mrb[16].mxu0 %vm248_vm1, %v1482_v20  ;;  %1442 = vmatmul.mubr.msk.bf16.gmra.mrb[16].mxu1 %vm248_vm1, %v1483_v21  ;;  %s963_s2 = sshll.u32 %s1520_s0, 4  ;;  %s964_s2 = int_to_ptr.vmem [resolvable:$true] %s963_s2 }
  0x27   :  { %1413 = vmatprep.mubr.msk.bf16.mxu0 %vm248_vm1, %v1484_v22  ;;  %1445 = vmatprep.mubr.msk.bf16.mxu1 %vm248_vm1, %v1485_v23  ;;  %s1496_s23 = scalar_lea.vmem %s964_s2, 4096  ;;  %p1501_p1 = scmp.lt.s32.totalorder %s964_s2, %s964_s2 }
  0x28   :  { %p1497_p0 = scmp.ne.s32.totalorder %s964_s2, %s1496_s23  ;;  %p1502_p2 = scmp.lt.s32.totalorder %s1496_s23, %s1496_s23 }
  0x2a   :  { %p1503_p3 = por %p1502_p2, %p1501_p1 }
  0x2c   :  { %p1504_p4 = pnand %p1503_p3, %p1497_p0 }
  0x2e   :  { %1414 = vmatmul.mubr.msk.bf16.gmra.mrb[20].mxu0 %vm248_vm1, %v1486_v24  ;;  %1446 = vmatmul.mubr.msk.bf16.gmra.mrb[20].mxu1 %vm248_vm1, %v1487_v25 }
  0x2f   :  { %1417 = vmatprep.mubr.msk.bf16.mxu0 %vm248_vm1, %v1488_v26  ;;  %1449 = vmatprep.mubr.msk.bf16.mxu1 %vm248_vm1, %v1489_v27 }
  0x36   :  { %1418 = vmatmul.mubr.msk.bf16.gmra.mrb[24].mxu0 %vm248_vm1, %v1490_v28  ;;  %1450 = vmatmul.mubr.msk.bf16.gmra.mrb[24].mxu1 %vm248_vm1, %v1491_v29 }
  0x37   :  { %1421 = vmatprep.mubr.msk.bf16.mxu0 %vm248_vm1, %v1492_v30  ;;  %1453 = vmatprep.mubr.msk.bf16.mxu1 %vm248_vm1, %v1493_v31 }
  0x3e   :  { %1422 = vmatmul.mubr.msk.bf16.gmra.mrb[28].mxu0 %vm248_vm1, %v1494_v32  ;;  %1454 = vmatmul.mubr.msk.bf16.gmra.mrb[28].mxu1 %vm248_vm1, %v1495_v33 }
  0xd9   :  { %v1395_v34 = vpop.f32.mrb[0].mxu0  ;;  %v1427_v36 = vpop.f32.mrb[0].mxu1 }
  0xda   :  { %v383_v37 = vpop.f32.mrb[1].mxu0  ;;  %v511_v38 = vpop.f32.mrb[1].mxu1  ;;  %v392_v40 = vadd.f32 %v1395_v34, %v1677_v35  ;;  %v520_v44 = vadd.f32 %v1427_v36, %v1677_v35 }
  0xdb   :  { %v1396_v39 = vpop.f32.mrb[2].mxu0  ;;  %v1428_v42 = vpop.f32.mrb[2].mxu1  ;;  %v384_v45 = vadd.f32 %v1677_v35, %v383_v37  ;;  %v512_v49 = vadd.f32 %v1677_v35, %v511_v38 }
  0xdc   :  { %v395_v41 = vadd.f32 %v1396_v39, %v1677_v35  ;;  %v386_v43 = vpop.f32.mrb[3].mxu0  ;;  %v523_v46 = vadd.f32 %v1428_v42, %v1677_v35  ;;  %v514_v48 = vpop.f32.mrb[3].mxu1 }
  0xdd   :  { %v387_v47 = vadd.f32 %v1677_v35, %v386_v43  ;;  %v515_v51 = vadd.f32 %v1677_v35, %v514_v48 }
  0xde   :  { %v1175_v50 = vpack.c.bf16 %v395_v41, %v392_v40  ;;  %v1255_v52 = vpack.c.bf16 %v523_v46, %v520_v44 }
  0xdf   :  { %v1170_v53 = vpack.c.bf16 %v387_v47, %v384_v45  ;;  %v1250_v54 = vpack.c.bf16 %v515_v51, %v512_v49 }
  0xe0   :  { %1327 = vst [vmem:[#allocation2 + $0x8] sm:$0xff] %v1175_v50   ;;  %1343 = vst [vmem:[#allocation2 + $0x88] sm:$0xff] %v1255_v52  }
  0xe1   :  { %1171 = vst [vmem:[#allocation2] sm:$0xff] %v1170_v53   ;;  %v1399_v55 = vpop.f32.mrb[4].mxu0  ;;  %1342 = vst [vmem:[#allocation2 + $0x80] sm:$0xff] %v1250_v54   ;;  %v1431_v56 = vpop.f32.mrb[4].mxu1 }
  0xe2   :  { %v399_v57 = vpop.f32.mrb[5].mxu0  ;;  %v527_v58 = vpop.f32.mrb[5].mxu1  ;;  %v408_v60 = vadd.f32 %v1399_v55, %v1677_v35  ;;  %v536_v0 = vadd.f32 %v1431_v56, %v1677_v35 }
  0xe3   :  { %v1400_v59 = vpop.f32.mrb[6].mxu0  ;;  %v1432_v62 = vpop.f32.mrb[6].mxu1  ;;  %v400_v1 = vadd.f32 %v1677_v35, %v399_v57  ;;  %v528_v5 = vadd.f32 %v1677_v35, %v527_v58 }
  0xe4   :  { %v411_v61 = vadd.f32 %v1400_v59, %v1677_v35  ;;  %v402_v63 = vpop.f32.mrb[7].mxu0  ;;  %v539_v2 = vadd.f32 %v1432_v62, %v1677_v35  ;;  %v530_v4 = vpop.f32.mrb[7].mxu1 }
  0xe5   :  { %v403_v3 = vadd.f32 %v1677_v35, %v402_v63  ;;  %v531_v7 = vadd.f32 %v1677_v35, %v530_v4 }
  0xe6   :  { %v1185_v6 = vpack.c.bf16 %v411_v61, %v408_v60  ;;  %v1265_v8 = vpack.c.bf16 %v539_v2, %v536_v0 }
  0xe7   :  { %v1180_v9 = vpack.c.bf16 %v403_v3, %v400_v1  ;;  %v1260_v10 = vpack.c.bf16 %v531_v7, %v528_v5 }
  0xe8   :  { %1329 = vst [vmem:[#allocation2 + $0x18] sm:$0xff] %v1185_v6   ;;  %1345 = vst [vmem:[#allocation2 + $0x98] sm:$0xff] %v1265_v8  }
  0xe9   :  { %1328 = vst [vmem:[#allocation2 + $0x10] sm:$0xff] %v1180_v9   ;;  %v1403_v11 = vpop.f32.mrb[8].mxu0  ;;  %1344 = vst [vmem:[#allocation2 + $0x90] sm:$0xff] %v1260_v10   ;;  %v1435_v12 = vpop.f32.mrb[8].mxu1 }
  0xea   :  { %v415_v13 = vpop.f32.mrb[9].mxu0  ;;  %v543_v14 = vpop.f32.mrb[9].mxu1  ;;  %v424_v16 = vadd.f32 %v1403_v11, %v1677_v35  ;;  %v552_v20 = vadd.f32 %v1435_v12, %v1677_v35 }
  0xeb   :  { %v1404_v15 = vpop.f32.mrb[10].mxu0  ;;  %v1436_v18 = vpop.f32.mrb[10].mxu1  ;;  %v416_v21 = vadd.f32 %v1677_v35, %v415_v13  ;;  %v544_v25 = vadd.f32 %v1677_v35, %v543_v14 }
  0xec   :  { %v427_v17 = vadd.f32 %v1404_v15, %v1677_v35  ;;  %v418_v19 = vpop.f32.mrb[11].mxu0  ;;  %v555_v22 = vadd.f32 %v1436_v18, %v1677_v35  ;;  %v546_v24 = vpop.f32.mrb[11].mxu1 }
  0xed   :  { %v419_v23 = vadd.f32 %v1677_v35, %v418_v19  ;;  %v547_v27 = vadd.f32 %v1677_v35, %v546_v24 }
  0xee   :  { %v1195_v26 = vpack.c.bf16 %v427_v17, %v424_v16  ;;  %v1275_v28 = vpack.c.bf16 %v555_v22, %v552_v20 }
  0xef   :  { %v1190_v29 = vpack.c.bf16 %v419_v23, %v416_v21  ;;  %v1270_v30 = vpack.c.bf16 %v547_v27, %v544_v25 }
  0xf0   :  { %1331 = vst [vmem:[#allocation2 + $0x28] sm:$0xff] %v1195_v26   ;;  %1347 = vst [vmem:[#allocation2 + $0xa8] sm:$0xff] %v1275_v28  }
  0xf1   :  { %1330 = vst [vmem:[#allocation2 + $0x20] sm:$0xff] %v1190_v29   ;;  %v1407_v31 = vpop.f32.mrb[12].mxu0  ;;  %1346 = vst [vmem:[#allocation2 + $0xa0] sm:$0xff] %v1270_v30   ;;  %v1439_v32 = vpop.f32.mrb[12].mxu1 }
  0xf2   :  { %v431_v33 = vpop.f32.mrb[13].mxu0  ;;  %v559_v34 = vpop.f32.mrb[13].mxu1  ;;  %v440_v37 = vadd.f32 %v1407_v31, %v1677_v35  ;;  %v568_v41 = vadd.f32 %v1439_v32, %v1677_v35 }
  0xf3   :  { %v1408_v36 = vpop.f32.mrb[14].mxu0  ;;  %v1440_v39 = vpop.f32.mrb[14].mxu1  ;;  %v432_v42 = vadd.f32 %v1677_v35, %v431_v33  ;;  %v560_v46 = vadd.f32 %v1677_v35, %v559_v34 }
  0xf4   :  { %v443_v38 = vadd.f32 %v1408_v36, %v1677_v35  ;;  %v434_v40 = vpop.f32.mrb[15].mxu0  ;;  %v571_v43 = vadd.f32 %v1440_v39, %v1677_v35  ;;  %v562_v45 = vpop.f32.mrb[15].mxu1 }
  0xf5   :  { %v435_v44 = vadd.f32 %v1677_v35, %v434_v40  ;;  %v563_v48 = vadd.f32 %v1677_v35, %v562_v45 }
  0xf6   :  { %v1205_v47 = vpack.c.bf16 %v443_v38, %v440_v37  ;;  %v1285_v49 = vpack.c.bf16 %v571_v43, %v568_v41 }
  0xf7   :  { %v1200_v50 = vpack.c.bf16 %v435_v44, %v432_v42  ;;  %v1280_v51 = vpack.c.bf16 %v563_v48, %v560_v46 }
  0xf8   :  { %1333 = vst [vmem:[#allocation2 + $0x38] sm:$0xff] %v1205_v47   ;;  %1349 = vst [vmem:[#allocation2 + $0xb8] sm:$0xff] %v1285_v49  }
  0xf9   :  { %1332 = vst [vmem:[#allocation2 + $0x30] sm:$0xff] %v1200_v50   ;;  %v1411_v52 = vpop.f32.mrb[16].mxu0  ;;  %1348 = vst [vmem:[#allocation2 + $0xb0] sm:$0xff] %v1280_v51   ;;  %v1443_v53 = vpop.f32.mrb[16].mxu1 }
  0xfa   :  { %v447_v54 = vpop.f32.mrb[17].mxu0  ;;  %v575_v55 = vpop.f32.mrb[17].mxu1  ;;  %v456_v57 = vadd.f32 %v1411_v52, %v1677_v35  ;;  %v584_v61 = vadd.f32 %v1443_v53, %v1677_v35 }
  0xfb   :  { %v1412_v56 = vpop.f32.mrb[18].mxu0  ;;  %v1444_v59 = vpop.f32.mrb[18].mxu1  ;;  %v448_v62 = vadd.f32 %v1677_v35, %v447_v54  ;;  %v576_v2 = vadd.f32 %v1677_v35, %v575_v55 }
  0xfc   :  { %v459_v58 = vadd.f32 %v1412_v56, %v1677_v35  ;;  %v450_v60 = vpop.f32.mrb[19].mxu0  ;;  %v587_v63 = vadd.f32 %v1444_v59, %v1677_v35  ;;  %v578_v1 = vpop.f32.mrb[19].mxu1 }
  0xfd   :  { %v451_v0 = vadd.f32 %v1677_v35, %v450_v60  ;;  %v579_v4 = vadd.f32 %v1677_v35, %v578_v1 }
  0xfe   :  { %v1215_v3 = vpack.c.bf16 %v459_v58, %v456_v57  ;;  %v1295_v5 = vpack.c.bf16 %v587_v63, %v584_v61 }
  0xff   :  { %v1210_v6 = vpack.c.bf16 %v451_v0, %v448_v62  ;;  %v1290_v7 = vpack.c.bf16 %v579_v4, %v576_v2 }
 0x100   :  { %1335 = vst [vmem:[#allocation2 + $0x48] sm:$0xff] %v1215_v3   ;;  %1351 = vst [vmem:[#allocation2 + $0xc8] sm:$0xff] %v1295_v5  }
 0x101   :  { %1334 = vst [vmem:[#allocation2 + $0x40] sm:$0xff] %v1210_v6   ;;  %v1415_v8 = vpop.f32.mrb[20].mxu0  ;;  %1350 = vst [vmem:[#allocation2 + $0xc0] sm:$0xff] %v1290_v7   ;;  %v1447_v9 = vpop.f32.mrb[20].mxu1 }
 0x102   :  { %v463_v10 = vpop.f32.mrb[21].mxu0  ;;  %v591_v11 = vpop.f32.mrb[21].mxu1  ;;  %v472_v13 = vadd.f32 %v1415_v8, %v1677_v35  ;;  %v600_v17 = vadd.f32 %v1447_v9, %v1677_v35 }
 0x103   :  { %v1416_v12 = vpop.f32.mrb[22].mxu0  ;;  %v1448_v15 = vpop.f32.mrb[22].mxu1  ;;  %v464_v18 = vadd.f32 %v1677_v35, %v463_v10  ;;  %v592_v22 = vadd.f32 %v1677_v35, %v591_v11 }
 0x104   :  { %v475_v14 = vadd.f32 %v1416_v12, %v1677_v35  ;;  %v466_v16 = vpop.f32.mrb[23].mxu0  ;;  %v603_v19 = vadd.f32 %v1448_v15, %v1677_v35  ;;  %v594_v21 = vpop.f32.mrb[23].mxu1 }
 0x105   :  { %v467_v20 = vadd.f32 %v1677_v35, %v466_v16  ;;  %v595_v24 = vadd.f32 %v1677_v35, %v594_v21 }
 0x106   :  { %v1225_v23 = vpack.c.bf16 %v475_v14, %v472_v13  ;;  %v1305_v25 = vpack.c.bf16 %v603_v19, %v600_v17 }
 0x107   :  { %v1220_v26 = vpack.c.bf16 %v467_v20, %v464_v18  ;;  %v1300_v27 = vpack.c.bf16 %v595_v24, %v592_v22 }
 0x108   :  { %1337 = vst [vmem:[#allocation2 + $0x58] sm:$0xff] %v1225_v23   ;;  %1353 = vst [vmem:[#allocation2 + $0xd8] sm:$0xff] %v1305_v25  }
 0x109   :  { %1336 = vst [vmem:[#allocation2 + $0x50] sm:$0xff] %v1220_v26   ;;  %v1419_v28 = vpop.f32.mrb[24].mxu0  ;;  %1352 = vst [vmem:[#allocation2 + $0xd0] sm:$0xff] %v1300_v27   ;;  %v1451_v29 = vpop.f32.mrb[24].mxu1 }
 0x10a   :  { %v479_v30 = vpop.f32.mrb[25].mxu0  ;;  %v607_v31 = vpop.f32.mrb[25].mxu1  ;;  %v488_v33 = vadd.f32 %v1419_v28, %v1677_v35  ;;  %v616_v38 = vadd.f32 %v1451_v29, %v1677_v35 }
 0x10b   :  { %v1420_v32 = vpop.f32.mrb[26].mxu0  ;;  %v1452_v36 = vpop.f32.mrb[26].mxu1  ;;  %v480_v39 = vadd.f32 %v1677_v35, %v479_v30  ;;  %v608_v43 = vadd.f32 %v1677_v35, %v607_v31 }
 0x10c   :  { %v491_v34 = vadd.f32 %v1420_v32, %v1677_v35  ;;  %v482_v37 = vpop.f32.mrb[27].mxu0  ;;  %v619_v40 = vadd.f32 %v1452_v36, %v1677_v35  ;;  %v610_v42 = vpop.f32.mrb[27].mxu1 }
 0x10d   :  { %v483_v41 = vadd.f32 %v1677_v35, %v482_v37  ;;  %v611_v45 = vadd.f32 %v1677_v35, %v610_v42 }
 0x10e   :  { %v1235_v44 = vpack.c.bf16 %v491_v34, %v488_v33  ;;  %v1315_v46 = vpack.c.bf16 %v619_v40, %v616_v38 }
 0x10f   :  { %v1230_v47 = vpack.c.bf16 %v483_v41, %v480_v39  ;;  %v1310_v48 = vpack.c.bf16 %v611_v45, %v608_v43 }
 0x110   :  { %1339 = vst [vmem:[#allocation2 + $0x68] sm:$0xff] %v1235_v44   ;;  %1355 = vst [vmem:[#allocation2 + $0xe8] sm:$0xff] %v1315_v46  }
 0x111   :  { %1338 = vst [vmem:[#allocation2 + $0x60] sm:$0xff] %v1230_v47   ;;  %v1423_v49 = vpop.f32.mrb[28].mxu0  ;;  %1354 = vst [vmem:[#allocation2 + $0xe0] sm:$0xff] %v1310_v48   ;;  %v1455_v50 = vpop.f32.mrb[28].mxu1 }
 0x112   :  { %v495_v51 = vpop.f32.mrb[29].mxu0  ;;  %v623_v52 = vpop.f32.mrb[29].mxu1  ;;  %v504_v54 = vadd.f32 %v1423_v49, %v1677_v35  ;;  %v632_v58 = vadd.f32 %v1455_v50, %v1677_v35 }
 0x113   :  { %v1424_v53 = vpop.f32.mrb[30].mxu0  ;;  %v1456_v56 = vpop.f32.mrb[30].mxu1  ;;  %v496_v59 = vadd.f32 %v1677_v35, %v495_v51  ;;  %v624_v63 = vadd.f32 %v1677_v35, %v623_v52 }
 0x114   :  { %v507_v55 = vadd.f32 %v1424_v53, %v1677_v35  ;;  %v498_v57 = vpop.f32.mrb[31].mxu0  ;;  %v635_v60 = vadd.f32 %v1456_v56, %v1677_v35  ;;  %v626_v62 = vpop.f32.mrb[31].mxu1 }
 0x115   :  { %v499_v61 = vadd.f32 %v1677_v35, %v498_v57  ;;  %v627_v1 = vadd.f32 %v1677_v35, %v626_v62 }
 0x116   :  { %v1245_v0 = vpack.c.bf16 %v507_v55, %v504_v54  ;;  %v1325_v2 = vpack.c.bf16 %v635_v60, %v632_v58 }
 0x117   :  { %v1240_v3 = vpack.c.bf16 %v499_v61, %v496_v59  ;;  %v1320_v4 = vpack.c.bf16 %v627_v1, %v624_v63 }
 0x118   :  { %1341 = vst [vmem:[#allocation2 + $0x78] sm:$0xff] %v1245_v0   ;;  %1357 = vst [vmem:[#allocation2 + $0xf8] sm:$0xff] %v1325_v2  }
 0x119   :  { %1340 = vst [vmem:[#allocation2 + $0x70] sm:$0xff] %v1240_v3   ;;  %1356 = vst [vmem:[#allocation2 + $0xf0] sm:$0xff] %v1320_v4  }
 0x11a   :  { %1507 = shalt.err (!%p1504_p4)
}
 0x11b   :  { %s1508_s26 = scalar_lea.hbm %s1758_s3, 4096 }
 0x11c   :  { %p1509_p5 = scmp.ne.s32.totalorder %s1758_s3, %s1508_s26  ;;  %p1512_p6 = scmp.lt.u32.totalorder %s1508_s26, %s1758_s3 }
 0x11e   :  { %p1514_p7 = pnand %p1512_p6, %p1509_p5 }
 0x120   :  { %1517 = shalt.err (!%p1514_p7)
}
 0x121   :  { %s1521_s4 = smov 64   ;;  %s1522_s5 = smov 4  }
 0x122   :  { %969 = dma.vmem_to_hbm [thread:$0]  %s964_s2, 4096, %s1758_s3, [#allocation3], %s1521_s4, %s1521_s4, %s1522_s5  }
 0x123   :  { %1518 = dma.done.wait [#allocation3], 4096  }
 0x124   :  { %1519 = vsyncadd [#allocation3], 4294963200 }
 0x125   :  { %973 = vsyncpa [#allocation3], 1 }

</bundles_post_ra>
